<compile_context>
chip_gen: v5e
topology: v5e:2x2
jax: 0.10.0
libtpu: 0.0.40
codegen_flags: <defaults>
</compile_context>

<pallas_src>
import jax
import jax.numpy as jnp
from jax.experimental import pallas as pl
from jax.experimental.pallas import tpu as pltpu

_TEMP = 0.07        # hard-coded literal in the original forward (`/ 0.07`)
_LANES = 128        # TPU lane width
_TILE_R_MAX = 64    # 64 * 128 = 8192 elems per row-tile (~32 KiB f32 / input)


def _nce_kernel(q_ref, k_ref, o_ref, out_ref, acc_pos, acc_neg):
    """Grid = (batch, d_tiles).  Blocks: q/k/o (1, TILE_R, 128), out (1, 1, 128).

    acc_pos / acc_neg: (1, 128) f32 lane-wise partial-sum accumulators.
    """
    kd = pl.program_id(1)

    @pl.when(kd == 0)
    def _init():
        acc_pos[...] = jnp.zeros_like(acc_pos)
        acc_neg[...] = jnp.zeros_like(acc_neg)

    # Load this D-tile (upcast in-register; storage dtype may be bf16).
    q = q_ref[0].astype(jnp.float32)   # (TILE_R, 128)
    k = k_ref[0].astype(jnp.float32)
    o = o_ref[0].astype(jnp.float32)

    # Lane-wise accumulate: reduce only over the sublane (row-chunk) axis per
    # step; the single cross-lane reduce is deferred to the finalize phase.
    acc_pos[...] += jnp.sum(q * o, axis=0, keepdims=True)   # (1, 128)
    acc_neg[...] += jnp.sum(q * k, axis=0, keepdims=True)   # (1, 128)

    @pl.when(kd == pl.num_programs(1) - 1)
    def _finalize():
        inv_t = jnp.float32(1.0 / _TEMP)
        l_pos = jnp.sum(acc_pos[...], axis=-1, keepdims=True) * inv_t  # (1, 1)
        l_neg = jnp.sum(acc_neg[...], axis=-1, keepdims=True) * inv_t  # (1, 1)
        # CrossEntropy(out, target=0), reduction='none', stable logsumexp.
        m = jnp.maximum(l_pos, l_neg)
        lse = m + jnp.log(jnp.exp(l_pos - m) + jnp.exp(l_neg - m))
        loss = lse - l_pos                                             # (1, 1)
        # Lane-dense single write (value replicated across lanes).
        out_ref[...] = jnp.broadcast_to(loss, out_ref.shape).astype(out_ref.dtype)


def patch_style_nce_loss(feat_q, feat_k, feat_o):
    """JAX/Pallas equivalent of PatchStyleNCELoss.forward (SHUFFLE_Y=True)."""
    # TODO(synk): forward only; training through pallas_call needs a custom_vjp
    # (feat_k detach is honored here via stop_gradient).
    batch = feat_q.shape[0]
    q = feat_q.reshape(batch, -1)
    k = jax.lax.stop_gradient(feat_k).reshape(batch, -1)  # feat_k.detach()
    o = feat_o.reshape(batch, -1)
    d = q.shape[1]

    # Choose a lane-dense tiling of the feature dim: D -> (R, 128) rows, with
    # TILE_R rows per grid step.  Zero-pad D if needed (zeros do not change
    # the dot products).
    r_raw = pl.cdiv(d, _LANES)
    if r_raw <= _TILE_R_MAX:
        tile_r = r_raw            # single D-tile; block == full second-last dim
        r_pad = r_raw
    else:
        tile_r = _TILE_R_MAX      # multiple of 8 -> satisfies (8, 128) tiling
        r_pad = pl.cdiv(r_raw, _TILE_R_MAX) * _TILE_R_MAX
    d_pad = r_pad * _LANES
    if d_pad != d:
        pad = ((0, 0), (0, d_pad - d))
        q = jnp.pad(q, pad)
        k = jnp.pad(k, pad)
        o = jnp.pad(o, pad)

    q = q.reshape(batch, r_pad, _LANES)
    k = k.reshape(batch, r_pad, _LANES)
    o = o.reshape(batch, r_pad, _LANES)

    grid = (batch, r_pad // tile_r)  # (parallel over batch, reduction over D)
    in_spec = pl.BlockSpec((1, tile_r, _LANES), lambda b, kd: (b, kd, 0))
    out_spec = pl.BlockSpec((1, 1, _LANES), lambda b, kd: (b, 0, 0))

    out = pl.pallas_call(
        _nce_kernel,
        out_shape=jax.ShapeDtypeStruct((batch, 1, _LANES), jnp.float32),
        grid=grid,
        in_specs=[in_spec, in_spec, in_spec],
        out_specs=out_spec,
        scratch_shapes=[
            pltpu.VMEM((1, _LANES), jnp.float32),  # acc_pos
            pltpu.VMEM((1, _LANES), jnp.float32),  # acc_neg
        ],
        compiler_params=pltpu.CompilerParams(
            dimension_semantics=("parallel", "arbitrary")),
    )(q, k, o)
    return out[:, 0, 0]  # (B,) — matches reduction='none'


def _reference(feat_q, feat_k, feat_o):
    """Pure-JAX reference mirroring the PyTorch code path."""
    b = feat_q.shape[0]
    qf = feat_q.reshape(b, -1).astype(jnp.float32)
    kf = feat_k.reshape(b, -1).astype(jnp.float32)
    of = feat_o.reshape(b, -1).astype(jnp.float32)
    l_pos = jnp.sum(qf * of, axis=-1, keepdims=True)
    l_neg = jnp.sum(qf * kf, axis=-1, keepdims=True)
    out = jnp.concatenate([l_pos, l_neg], axis=1) / 0.07
    # CE with target 0, reduction='none'
    return jax.nn.logsumexp(out, axis=1) - out[:, 0]


if __name__ == "__main__":
    key = jax.random.PRNGKey(0)
    kq, kk, ko = jax.random.split(key, 3)

    # Small NCHW feature maps, consistent with the module's flatten-then-bmm use.
    B, C, H, W = 2, 4, 16, 16
    feat_q = jax.random.normal(kq, (B, C, H, W), dtype=jnp.float32)
    feat_k = jax.random.normal(kk, (B, C, H, W), dtype=jnp.float32)
    feat_o = jax.random.normal(ko, (B, C, H, W), dtype=jnp.float32)

    loss = patch_style_nce_loss(feat_q, feat_k, feat_o)
    loss = jax.block_until_ready(loss)

    ref = _reference(feat_q, feat_k, feat_o)
    assert loss.shape == (B,)
    assert jnp.allclose(loss, ref, rtol=1e-4, atol=1e-4), (loss, ref)

    print("KERNEL_OK")
</pallas_src>

<mosaic_0001>
module attributes {stable_mosaic.version = 11 : i64} {
  func.func @_nce_kernel(%arg0: i32, %arg1: i32, %arg2: memref<1x8x128xf32, #tpu.memory_space<vmem>>, %arg3: memref<1x8x128xf32, #tpu.memory_space<vmem>>, %arg4: memref<1x8x128xf32, #tpu.memory_space<vmem>>, %arg5: memref<1x1x128xf32, #tpu.memory_space<vmem>>, %arg6: memref<1x128xf32, #tpu.memory_space<vmem>>, %arg7: memref<1x128xf32, #tpu.memory_space<vmem>>) attributes {dimension_semantics = [#tpu.dimension_semantics<parallel>, #tpu.dimension_semantics<arbitrary>], iteration_bounds = array<i64: 2, 1>, scalar_prefetch = 0 : i64, scratch_operands = 2 : i64, tpu.core_type = #tpu.core_type<tc>, window_params = [{transform_indices = @transform_0, window_bounds = array<i64: 1, 8, 128>}, {transform_indices = @transform_1, window_bounds = array<i64: 1, 8, 128>}, {transform_indices = @transform_2, window_bounds = array<i64: 1, 8, 128>}, {transform_indices = @transform_3, window_bounds = array<i64: 1, 1, 128>}]} {
    %c0_i32 = arith.constant 0 : i32
    %0 = arith.cmpi eq, %arg1, %c0_i32 : i32
    %1 = arith.extui %0 : i1 to i32
    %c0_i32_0 = arith.constant 0 : i32
    %2 = arith.cmpi ne, %1, %c0_i32_0 : i32
    scf.if %2 {
      %cst_20 = arith.constant 0.000000e+00 : f32
      %24 = vector.broadcast %cst_20 : f32 to vector<1x128xf32>
      %c0_21 = arith.constant 0 : index
      %c0_22 = arith.constant 0 : index
      %25 = vector.load %arg6[%c0_21, %c0_22] : memref<1x128xf32, #tpu.memory_space<vmem>>, vector<1x128xf32>
      tpu.vector_store %arg6[%c0_21, %c0_22], %24 {strides = array<i32>} : memref<1x128xf32, #tpu.memory_space<vmem>>, vector<1x128xf32>,
      %cst_23 = arith.constant 0.000000e+00 : f32
      %26 = vector.broadcast %cst_23 : f32 to vector<1x128xf32>
      %c0_24 = arith.constant 0 : index
      %c0_25 = arith.constant 0 : index
      %27 = vector.load %arg7[%c0_24, %c0_25] : memref<1x128xf32, #tpu.memory_space<vmem>>, vector<1x128xf32>
      tpu.vector_store %arg7[%c0_24, %c0_25], %26 {strides = array<i32>} : memref<1x128xf32, #tpu.memory_space<vmem>>, vector<1x128xf32>,
    } else {
    }
    %c0 = arith.constant 0 : index
    %c0_1 = arith.constant 0 : index
    %c0_2 = arith.constant 0 : index
    %3 = vector.load %arg2[%c0, %c0_1, %c0_2] : memref<1x8x128xf32, #tpu.memory_space<vmem>>, vector<1x8x128xf32>
    %4 = vector.shape_cast %3 : vector<1x8x128xf32> to vector<8x128xf32>
    %c0_3 = arith.constant 0 : index
    %c0_4 = arith.constant 0 : index
    %c0_5 = arith.constant 0 : index
    %5 = vector.load %arg3[%c0_3, %c0_4, %c0_5] : memref<1x8x128xf32, #tpu.memory_space<vmem>>, vector<1x8x128xf32>
    %6 = vector.shape_cast %5 : vector<1x8x128xf32> to vector<8x128xf32>
    %c0_6 = arith.constant 0 : index
    %c0_7 = arith.constant 0 : index
    %c0_8 = arith.constant 0 : index
    %7 = vector.load %arg4[%c0_6, %c0_7, %c0_8] : memref<1x8x128xf32, #tpu.memory_space<vmem>>, vector<1x8x128xf32>
    %8 = vector.shape_cast %7 : vector<1x8x128xf32> to vector<8x128xf32>
    %c0_9 = arith.constant 0 : index
    %c0_10 = arith.constant 0 : index
    %9 = vector.load %arg6[%c0_9, %c0_10] : memref<1x128xf32, #tpu.memory_space<vmem>>, vector<1x128xf32>
    %10 = arith.mulf %4, %8 : vector<8x128xf32>
    %cst = arith.constant dense<0.000000e+00> : vector<128xf32>
    %11 = vector.multi_reduction <add>, %10, %cst [0] : vector<8x128xf32> to vector<128xf32>
    %12 = vector.shape_cast %11 : vector<128xf32> to vector<1x128xf32>
    %13 = arith.addf %9, %12 : vector<1x128xf32>
    %c0_11 = arith.constant 0 : index
    %c0_12 = arith.constant 0 : index
    %14 = vector.load %arg6[%c0_11, %c0_12] : memref<1x128xf32, #tpu.memory_space<vmem>>, vector<1x128xf32>
    tpu.vector_store %arg6[%c0_11, %c0_12], %13 {strides = array<i32>} : memref<1x128xf32, #tpu.memory_space<vmem>>, vector<1x128xf32>,
    %c0_13 = arith.constant 0 : index
    %c0_14 = arith.constant 0 : index
    %15 = vector.load %arg7[%c0_13, %c0_14] : memref<1x128xf32, #tpu.memory_space<vmem>>, vector<1x128xf32>
    %16 = arith.mulf %4, %6 : vector<8x128xf32>
    %cst_15 = arith.constant dense<0.000000e+00> : vector<128xf32>
    %17 = vector.multi_reduction <add>, %16, %cst_15 [0] : vector<8x128xf32> to vector<128xf32>
    %18 = vector.shape_cast %17 : vector<128xf32> to vector<1x128xf32>
    %19 = arith.addf %15, %18 : vector<1x128xf32>
    %c0_16 = arith.constant 0 : index
    %c0_17 = arith.constant 0 : index
    %20 = vector.load %arg7[%c0_16, %c0_17] : memref<1x128xf32, #tpu.memory_space<vmem>>, vector<1x128xf32>
    tpu.vector_store %arg7[%c0_16, %c0_17], %19 {strides = array<i32>} : memref<1x128xf32, #tpu.memory_space<vmem>>, vector<1x128xf32>,
    %c0_i32_18 = arith.constant 0 : i32
    %21 = arith.cmpi eq, %arg1, %c0_i32_18 : i32
    %22 = arith.extui %21 : i1 to i32
    %c0_i32_19 = arith.constant 0 : i32
    %23 = arith.cmpi ne, %22, %c0_i32_19 : i32
    scf.if %23 {
      %c0_20 = arith.constant 0 : index
      %c0_21 = arith.constant 0 : index
      %24 = vector.load %arg6[%c0_20, %c0_21] : memref<1x128xf32, #tpu.memory_space<vmem>>, vector<1x128xf32>
      %cst_22 = arith.constant dense<0.000000e+00> : vector<1xf32>
      %25 = vector.multi_reduction <add>, %24, %cst_22 [1] : vector<1x128xf32> to vector<1xf32>
      %26 = vector.shape_cast %25 : vector<1xf32> to vector<1x1xf32>
      %cst_23 = arith.constant 14.2857141 : f32
      %27 = vector.broadcast %cst_23 : f32 to vector<1x1xf32>
      %28 = arith.mulf %26, %27 : vector<1x1xf32>
      %c0_24 = arith.constant 0 : index
      %c0_25 = arith.constant 0 : index
      %29 = vector.load %arg7[%c0_24, %c0_25] : memref<1x128xf32, #tpu.memory_space<vmem>>, vector<1x128xf32>
      %cst_26 = arith.constant dense<0.000000e+00> : vector<1xf32>
      %30 = vector.multi_reduction <add>, %29, %cst_26 [1] : vector<1x128xf32> to vector<1xf32>
      %31 = vector.shape_cast %30 : vector<1xf32> to vector<1x1xf32>
      %cst_27 = arith.constant 14.2857141 : f32
      %32 = vector.broadcast %cst_27 : f32 to vector<1x1xf32>
      %33 = arith.mulf %31, %32 : vector<1x1xf32>
      %34 = arith.maximumf %28, %33 : vector<1x1xf32>
      %35 = arith.subf %28, %34 : vector<1x1xf32>
      %36 = math.exp %35 : vector<1x1xf32>
      %37 = arith.subf %33, %34 : vector<1x1xf32>
      %38 = math.exp %37 : vector<1x1xf32>
      %39 = arith.addf %36, %38 : vector<1x1xf32>
      %40 = math.log %39 : vector<1x1xf32>
      %41 = arith.addf %34, %40 : vector<1x1xf32>
      %42 = arith.subf %41, %28 : vector<1x1xf32>
      %43 = vector.shape_cast %42 : vector<1x1xf32> to vector<1x1x1xf32>
      %44 = vector.broadcast %43 : vector<1x1x1xf32> to vector<1x1x128xf32>
      %c0_28 = arith.constant 0 : index
      %c0_29 = arith.constant 0 : index
      %c0_30 = arith.constant 0 : index
      %45 = vector.load %arg5[%c0_28, %c0_29, %c0_30] : memref<1x1x128xf32, #tpu.memory_space<vmem>>, vector<1x1x128xf32>
      tpu.vector_store %arg5[%c0_28, %c0_29, %c0_30], %44 {strides = array<i32>} : memref<1x1x128xf32, #tpu.memory_space<vmem>>, vector<1x1x128xf32>,
    } else {
    }
    return
  }
  func.func @transform_0(%arg0: i32, %arg1: i32) -> (i32, i32, i32) {
    %c0_i32 = arith.constant 0 : i32
    %c0_i32_0 = arith.constant 0 : i32
    return %arg0, %arg1, %c0_i32 : i32, i32, i32
  }
  func.func @transform_1(%arg0: i32, %arg1: i32) -> (i32, i32, i32) {
    %c0_i32 = arith.constant 0 : i32
    %c0_i32_0 = arith.constant 0 : i32
    return %arg0, %arg1, %c0_i32 : i32, i32, i32
  }
  func.func @transform_2(%arg0: i32, %arg1: i32) -> (i32, i32, i32) {
    %c0_i32 = arith.constant 0 : i32
    %c0_i32_0 = arith.constant 0 : i32
    return %arg0, %arg1, %c0_i32 : i32, i32, i32
  }
  func.func @transform_3(%arg0: i32, %arg1: i32) -> (i32, i32, i32) {
    %c0_i32 = arith.constant 0 : i32
    %c0_i32_0 = arith.constant 0 : i32
    %c0_i32_1 = arith.constant 0 : i32
    return %arg0, %c0_i32, %c0_i32_0 : i32, i32, i32
  }
}

</mosaic_0001>

<bundles_post_ra>
// kernel: tpu_custom_call.1
= control target key start
LH: loop header
LB: loop body
LE: loop exit
PB: predicated region body
PF: predicated region fallthrough
CT: control target
= control target key end

     0   :  { %s919_s0 = inlined_call_operand.hbm [shape: f32[2,8,128], index: 0, kind: input, shape index: {}]   ;;  %s920_s1 = inlined_call_operand.hbm [shape: f32[2,8,128], index: 1, kind: input, shape index: {}]   ;;  %s921_s2 = inlined_call_operand.hbm [shape: f32[2,8,128], index: 2, kind: input, shape index: {}]   ;;  %s922_s3 = inlined_call_operand.hbm [shape: f32[2,1,128], index: 3, kind: output, shape index: {}]  }
   0x1   :  { %925 = sst [smem:[#allocation17_spill]] %s920_s1 }
   0x2   :  { %8 = vsyncpa [#allocation5], 0 }
   0x3   :  { %10 = vsyncpa [#allocation5 + $0x1], 0 }
   0x4   :  { %11 = vsyncpa [#allocation8], 0 }
   0x5   :  { %13 = vsyncpa [#allocation8 + $0x1], 0 }
   0x6   :  { %14 = vsyncpa [#allocation6], 0 }
   0x7   :  { %16 = vsyncpa [#allocation6 + $0x1], 0  ;;  %s766_s12 = smov 0   ;;  %s768_s13 = smov 0  }
   0x8   :  { %s770_s14 = smov 0   ;;  %s772_s15 = smov 0  }
   0x9   :  { %s774_s16 = smov 0   ;;  %s776_s17 = smov 0  }
   0xa LB: > { %926 = sst [smem:[#allocation14_spill]] %s739_s16  ;;  %s797_s18 = sadd.s32 4294967295, %s743_s17   ;;  %s743_s17 = sphi %s776_s17, %s22_s17   ;;  %s739_s16 = sphi %s774_s16, %s938_s16   ;;  %s735_s15 = sphi %s772_s15, %s937_s15   ;;  %s731_s14 = sphi %s770_s14, %s941_s14   ;;  %s727_s13 = sphi %s768_s13, %s940_s13   ;;  %s723_s12 = sphi %s766_s12, %s939_s12  }
   0xb   : > { %s473_s19 = sadd.s32 4294967294, %s743_s17   ;;  %s34_s20 = sadd.s32 1, %s739_s16 }
   0xc   : > { %s43_s21 = sadd.s32 1, %s731_s14  ;;  %p36_p0 = scmp.ge.s32.totalorder %s34_s20, 2 }
   0xd   : > { %p50_p1 = scmp.ne.s32.totalorder %s731_s14, %s727_s13  ;;  %p51_p2 = scmp.eq.s32.totalorder %s743_s17, 0 }
   0xe   : > { %p56_p3 = scmp.ne.s32.totalorder %s727_s13, %s723_s12  ;;  %s943_s20 = smov (%p36_p0, %s34_s20), 0 }
   0xf   : > { %927 = sst [smem:[#allocation15_spill]] %s943_s20  ;;  %p809_p4 = por %p51_p2, %p50_p1 }
  0x10   : > { %p57_p5 = scmp.eq.s32.totalorder %s797_s18, 0  ;;  %s38_s23 = ssub.s32 %s739_s16, %s943_s20 }
  0x11   : > { %p136_p6 = scmp.eq.s32.totalorder %s797_s18, 1  ;;  %p41_p7 = scmp.eq.s32.totalorder %s38_s23, 0 }
  0x12   : > { %p817_p8 = por %p57_p5, %p56_p3  ;;  %p142_p10 = scmp.eq.s32.totalorder %s473_s19, 1 }
  0x13   : > { %p821_p9 = por %p136_p6, %p50_p1  ;;  %p475_p12 = scmp.ge.s32.totalorder %s743_s17, 2 }
  0x14   : > { %s826_s26 = scalar_select %p41_p7, %s731_s14, %s43_s21  }
  0x15   : > { %p828_p11 = por %p142_p10, %p56_p3  ;;  %p510_p13 = scmp.lt.s32.totalorder %s743_s17, 2 }
  0x16   : > { %931 = sst [smem:[#allocation16_spill]] %s826_s26  ;;  %s162_s28 = sand.u32 1, %s731_s14  }
  0x17   : > { %s476_s29 = sshll.u32 %s162_s28, 3  ;;  %s477_s30 = sshll.u32 %s739_s16, 3 }
  0x18   : > { %p838_p0 = pnand %p510_p13, %p809_p4  ;;  %s182_s5 = sand.u32 1, %s743_s17  }
  0x19   : > { %s934_s1 = sld [smem:[#allocation17_spill]]  ;;  %s186_s10 = scalar_lea.vmem [#allocation7], %s476_s29 }
  0x1a   : > { %s195_s11 = sshll.u32 %s186_s10, 4  ;;  %s183_s19 = scalar_lea.sflag [#allocation8], %s182_s5  ;;  %s196_s11 = int_to_ptr.vmem [resolvable:$true] %s195_s11 }
  0x1b   : > { %p482_p1 = scmp.ge.s32.totalorder %s743_s17, 1  ;;  %p220_p2 = scmp.lt.s32.totalorder %s743_s17, 3 }
  0x1c   : > { %s171_s6 = scalar_lea.hbm %s919_s0, %s477_s30  ;;  %s163_s10 = scalar_lea.sflag [#allocation5], %s162_s28 }
  0x1d   : > { %p850_p3 = pnand %p482_p1, %p220_p2  ;;  %s173_s7 = sshll.u32 %s171_s6, 4  ;;  %s174_s7 = int_to_ptr.hbm [resolvable:$true] %s173_s7 }
  0x1e   : > { %s206_s16 = scalar_lea.vmem [#allocation9], %s476_s29  ;;  %s867_s22 = sand.u32 (!%p850_p3), 1, %s727_s13  }
  0x1f   : > { %s191_s8 = scalar_lea.hbm %s934_s1, %s477_s30  ;;  %s215_s26 = sshll.u32 %s206_s16, 4  ;;  %s216_s26 = int_to_ptr.vmem [resolvable:$true] %s215_s26 }
  0x20   : > { %s193_s9 = sshll.u32 %s191_s8, 4  ;;  %s166_s8 = scalar_lea.vmem [#allocation4], %s476_s29  ;;  %s194_s9 = int_to_ptr.hbm [resolvable:$true] %s193_s9 }
  0x21   : > { %502 = dma.hbm_to_vmem [thread:$0]  (!%p838_p0), %s194_s9, 128, %s196_s11, %s183_s19  }
  0x22   : > { %s175_s1 = sshll.u32 %s166_s8, 4  ;;  %s211_s11 = scalar_lea.hbm %s921_s2, %s477_s30  ;;  %s176_s1 = int_to_ptr.vmem [resolvable:$true] %s175_s1 }
  0x23   : > { %499 = dma.hbm_to_vmem [thread:$0]  (!%p838_p0), %s174_s7, 128, %s176_s1, %s163_s10  }
  0x24   : > { %s213_s20 = sshll.u32 %s211_s11, 4  ;;  %224 = sbr.rel (%p850_p3) target bundleno = 230 (0xe6), region = 32  ;;  %s214_s20 = int_to_ptr.hbm [resolvable:$true] %s213_s20 }
  0x25   : > { %505 = dma.hbm_to_vmem [thread:$0]  (!%p838_p0), %s214_s20, 128, %s216_s26, %s183_s19  }
  0x26   : > { %s483_s1 = sshll.u32 (!%p850_p3), %s867_s22, 3  ;;  %s227_s28 = scalar_lea.sflag (!%p850_p3), [#allocation5], %s867_s22 }
  0x27   : > { %s230_s23 = scalar_lea.vmem (!%p850_p3), [#allocation4], %s483_s1 }
  0x29   : > { %710 = dma.done.wait (%p817_p8), %s227_s28, 128  }
  0x2a   : > { %712 = vsyncadd (%p817_p8), %s227_s28, 4294967168  ;;  %s236_s16 = sand.u32 1, %s797_s18   ;;  %s240_s26 = scalar_lea.vmem [#allocation7], %s483_s1 }
  0x2b   : > { %s237_s20 = scalar_lea.sflag [#allocation8], %s236_s16 }
  0x2c   : > { %714 = dma.done.wait (%p817_p8), %s237_s20, 256  }
  0x2d   : > { %716 = vsyncadd (%p817_p8), %s237_s20, 4294967040  ;;  %v745_v0 = vmov 0.0   ;;  %v289_v1 = vld [vmem:[%s230_s23] sm:$0xff]  ;;  %s250_s29 = scalar_lea.vmem [#allocation9], %s483_s1  ;;  %v290_v3 = vld [vmem:[%s240_s26] sm:$0xff]  ;;  %vm316_vm0 = vcmask 1040384   ;;  %s348_s30 = scalar_lea.hbm %s922_s3, %s735_s15 }
  0x2e   : > { %287 = vst [vmem:[#allocation2] sm:$0x1] %v745_v0  ;;  %v291_v2 = vld [vmem:[%s250_s29] sm:$0xff]  ;;  %v303_v5 = vmul.f32 %v290_v3, %v289_v1  ;;  %s282_s4 = scalar_lea.vmem [#allocation10], %s867_s22  ;;  %s352_s21 = sshll.u32 %s348_s30, 4  ;;  %s353_s21 = int_to_ptr.hbm [resolvable:$true] %s352_s21 }
  0x2f   : > { %288 = vst [vmem:[#allocation3] sm:$0x1] %v745_v0  ;;  %v293_v4 = vmul.f32 %v291_v2, %v289_v1  ;;  %s350_s19 = sshll.u32 %s282_s4, 4  ;;  %s340_s6 = scalar_lea.sflag [#allocation6], %s867_s22  ;;  %s351_s19 = int_to_ptr.vmem [resolvable:$true] %s350_s19 }
  0x30   : > { %v304_v7 = vrot.slane %v303_v5, 4  ;;  %s671_s7 = sshra.s32 %s353_s21, 4  ;;  %s677_s5 = scalar_lea.hbm %s922_s3, 2  ;;  %s672_s7 = int_to_ptr.hbm [resolvable:$true] %s671_s7 }
  0x31   : > { %v294_v6 = vrot.slane %v293_v4, 4  ;;  %s673_s8 = scalar_lea.hbm %s672_s7, 1  ;;  %p678_p7 = scmp.lt.s32.totalorder %s672_s7, %s922_s3 }
  0x32   : > { %v305_v9 = vadd.f32 %v304_v7, %v303_v5  ;;  %p674_p4 = scmp.ne.s32.totalorder %s672_s7, %s673_s8  ;;  %p679_p8 = scmp.lt.s32.totalorder %s677_s5, %s673_s8 }
  0x33   : > { %v295_v8 = vadd.f32 %v294_v6, %v293_v4 }
  0x34   : > { %v306_v11 = vrot.slane %v305_v9, 2  ;;  %p675_p5 = pnand %p674_p4, %p821_p9  ;;  %p680_p10 = por %p679_p8, %p678_p7 }
  0x35   : > { %v296_v10 = vrot.slane %v295_v8, 2  ;;  %v292_v16 = vld [vmem:[#allocation2] sm:$0x1] }
  0x36   : > { %v307_v13 = vadd.f32 %v306_v11, %v305_v9  ;;  %v302_v17 = vld [vmem:[#allocation3] sm:$0x1]  ;;  %p676_p6 = pneg %p675_p5 }
  0x37   : > { %v297_v12 = vadd.f32 %v296_v10, %v295_v8 }
  0x38   : > { %v308_v15 = vrot.slane %v307_v13, 1  ;;  %p681_p13 = pnand %p680_p10, %p676_p6 }
  0x39   : > { %v298_v14 = vrot.slane %v297_v12, 1 }
  0x3a   : > { %v309_v19 = vadd.f32 %v308_v15, %v307_v13 }
  0x3b   : > { %v299_v18 = vadd.f32 %v298_v14, %v297_v12 }
  0x3c   : > { %v310_v21 = vadd.f32 %v309_v19, %v302_v17 }
  0x3d   : > { %v300_v20 = vadd.f32 %v299_v18, %v292_v16 }
  0x3e   : > { %311 = vst [vmem:[#allocation3] sm:$0x1] %v310_v21 }
  0x3f   : > { %301 = vst [vmem:[#allocation2] sm:$0x1] %v300_v20 }
  0x45   : > { %v321_v24 = vld [vmem:[#allocation3] sm:$0x1] }
  0x46   : > { %v315_v22 = vld [vmem:[#allocation2] sm:$0x1]  ;;  %v322_v25 = vsel %vm316_vm0, %v321_v24, 0.0 }
  0x47   : > { %v317_v23 = vsel %vm316_vm0, %v315_v22, 0.0 }
  0x48   : > { %318 = vadd.xlane.f32.xlu0 %v317_v23 }
  0x50   : > { %323 = vadd.xlane.f32.xlu0 %v322_v25 }
  0xbb   : > { %v319_v26 = vpop.xlane.xlu0 %318 }
  0xbc   : > { %v320_v28 = vmul.f32 14.285714, %v319_v26 }
  0xc3   : > { %v324_v27 = vpop.xlane.xlu0 %323 }
  0xc4   : > { %v325_v29 = vmul.f32 14.285714, %v324_v27 }
  0xc6   : > { %v326_v30 = vmax.f32 %v320_v28, %v325_v29 }
  0xc8   : > { %v327_v31 = vsub.f32 %v320_v28, %v326_v30  ;;  %v330_v32 = vsub.f32 %v325_v29, %v326_v30 }
  0xca   : > { %v328_v33 = vmul.f32 1.442695, %v327_v31  ;;  %v331_v34 = vmul.f32 1.442695, %v330_v32 }
  0xcc   : > { %561 = vpow2.f32 %v328_v33 }
  0xcd   : > { %563 = vpow2.f32 %v331_v34 }
  0xd2   : > { %v562_v35 = vpop.eup %561 }
  0xd3   : > { %v564_v36 = vpop.eup %563 }
  0xd4   : > { %v333_v37 = vadd.f32 %v564_v36, %v562_v35 }
  0xd6   : > { %565 = vlog2.f32 %v333_v37 }
  0xdc   : > { %v566_v38 = vpop.eup %565 }
  0xdd   : > { %v335_v39 = vmul.f32 0.6931472, %v566_v38 }
  0xdf   : > { %v336_v40 = vadd.f32 %v335_v39, %v326_v30 }
  0xe1   : > { %v337_v41 = vsub.f32 %v336_v40, %v320_v28 }
  0xe3   : > { %338 = vst [vmem:[%s282_s4] sm:$0x1] %v337_v41 }
  0xe4   : > { %684 = shalt.err (!%p681_p13)
}
  0xe5   : > { %494 = dma.vmem_to_hbm [thread:$0]  (%p821_p9), %s351_s19, 16, %s353_s21, %s340_s6  }
  0xe6 PF: > { %s364_s22 = sand.u32 1, %s723_s12   ;;  %p507_p0 = pnand %p475_p12, %p828_p11 }
  0xe7   : > { %s365_s1 = scalar_lea.sflag [#allocation6], %s364_s22 }
  0xe8   : > { %p508_p1 = pneg %p507_p0 }
  0xea   : > { %718 = dma.done.wait (%p508_p1), %s365_s1, 16  }
  0xeb   : > { %720 = vsyncadd (%p508_p1), %s365_s1, 4294967280  ;;  %s22_s17 = sadd.s32 1, %s743_s17   ;;  %s936_s28 = sld [smem:[#allocation16_spill]] }
  0xec   : > { %p19_p2 = scmp.ge.s32.totalorder %s22_s17, 4   ;;  %s937_s15 = sld [smem:[#allocation14_spill]] }
  0xed   : > { %s938_s16 = sld [smem:[#allocation15_spill]]  ;;  %s939_s12 = smov %s727_s13 }
  0xee   : > { %s940_s13 = smov %s731_s14  ;;  %21 = sbr.rel (!%p19_p2) target bundleno = 10 (0xa), region = 109 }
  0xf1   : > { %s941_s14 = smov %s936_s28 }
  0xf3   :  { %370 = vsyncpa [#allocation5], 1 }
  0xf4   :  { %372 = vsyncpa [#allocation5 + $0x1], 1 }
  0xf5   :  { %373 = vsyncpa [#allocation8], 1 }
  0xf6   :  { %375 = vsyncpa [#allocation8 + $0x1], 1 }
  0xf7   :  { %376 = vsyncpa [#allocation6], 1 }
  0xf8   :  { %378 = vsyncpa [#allocation6 + $0x1], 1 }

</bundles_post_ra>
